<compile_context>
chip_gen: v7x
topology: tpu7x:2x2x1
jax: 0.10.0
libtpu: 0.0.40
codegen_flags: <defaults>
</compile_context>

<pallas_src>
import jax
import jax.numpy as jnp
from jax.experimental import pallas as pl
from jax.experimental.pallas import tpu as pltpu


# ----------------------------------------------------------------------------
# Kernel: one batch tile of the collapsed affine map.
#   b_ref : (1, 1)  f32 scalar bias, SMEM
#   x_ref : (TB, D) input tile, VMEM
#   w_ref : (1, D)  collapsed weight row (VMEM-resident across the grid)
#   o_ref : (TB, 1) output tile
# ----------------------------------------------------------------------------
def collapsed_mlp_kernel(b_ref, x_ref, w_ref, o_ref):
    # VPU elementwise multiply (weight row broadcasts over the batch sublanes)
    # + XLU cross-lane reduction -> (TB, 1).  No MXU pass needed for N=1.
    s = jnp.sum(x_ref[...] * w_ref[...], axis=-1, keepdims=True)
    o_ref[...] = (s + b_ref[0, 0]).astype(o_ref.dtype)


# ----------------------------------------------------------------------------
# Parameter handling
# ----------------------------------------------------------------------------
def init_params(key, input_size, dtype=jnp.float32):
    """Matches the PyTorch init: every weight ~ N(0, 1/(input_size+1)),
    every bias = 0.  Weights stored as (in_features, out_features)."""
    dims = [input_size, 1024, 128, 64, 16, 1]
    std = 1.0 / (input_size + 1)
    keys = jax.random.split(key, len(dims) - 1)
    params = []
    for k, d_in, d_out in zip(keys, dims[:-1], dims[1:]):
        w = (jax.random.normal(k, (d_in, d_out), jnp.float32) * std).astype(dtype)
        b = jnp.zeros((d_out,), dtype)
        params.append((w, b))
    return params


def collapse_params(params):
    """Fold the purely-affine stack (dropout = identity at inference) into a
    single (1, input_size) weight row and a (1, 1) scalar bias, in f32.
    Done once, outside the kernel."""
    w_eff, b_eff = None, None
    for w, b in params:
        w = w.astype(jnp.float32)
        b = b.astype(jnp.float32)
        if w_eff is None:
            w_eff, b_eff = w, b
        else:
            w_eff = jnp.dot(w_eff, w)
            b_eff = jnp.dot(b_eff, w) + b
    w_row = w_eff.reshape(1, -1)          # (1, input_size): broadcasts over rows
    b_scalar = b_eff.reshape(1, 1)        # (1, 1) SMEM scalar
    return w_row, b_scalar


# ----------------------------------------------------------------------------
# Wrapper
# ----------------------------------------------------------------------------
def _round_up(n, m):
    return ((n + m - 1) // m) * m


def _pick_block_batch(batch, d, requested):
    # Keep the two double-buffered (TB, D) f32 x-tiles under ~16 MiB so we stay
    # comfortably inside the scoped-VMEM default on v5e/v6e/v7x.
    vmem_budget = 16 * 1024 * 1024
    max_tb = max(8, (vmem_budget // (2 * d * 4)) // 8 * 8)
    tb = min(requested, max_tb, _round_up(batch, 8))
    return max(8, tb)


def mlp_forward(x, collapsed, *, block_batch=512):
    """x: (batch, input_size).  collapsed = collapse_params(params)."""
    w_row, b_eff = collapsed
    batch, d = x.shape
    assert w_row.shape == (1, d)

    tb = _pick_block_batch(batch, d, block_batch)
    padded = _round_up(batch, tb)
    if padded != batch:
        x = jnp.pad(x, ((0, padded - batch), (0, 0)))

    grid = (pl.cdiv(padded, tb),)

    out = pl.pallas_call(
        collapsed_mlp_kernel,
        out_shape=jax.ShapeDtypeStruct((padded, 1), x.dtype),
        grid=grid,
        in_specs=[
            pl.BlockSpec(memory_space=pltpu.MemorySpace.SMEM),   # bias scalar
            pl.BlockSpec((tb, d), lambda i: (i, 0)),             # x batch tile
            pl.BlockSpec((1, d), lambda i: (0, 0)),              # resident weight row
        ],
        out_specs=pl.BlockSpec((tb, 1), lambda i: (i, 0)),
        compiler_params=pltpu.CompilerParams(
            dimension_semantics=("parallel",),                   # megacore on v7x
        ),
    )(b_eff, x, w_row)

    return out[:batch]


# Pure-JAX layered reference (dropout = identity at inference).
def mlp_reference(x, params):
    h = x.astype(jnp.float32)
    for w, b in params:
        h = jnp.dot(h, w) + b
    return h.astype(x.dtype)


if __name__ == "__main__":
    key = jax.random.PRNGKey(0)
    k_params, k_x = jax.random.split(key)

    input_size = 64   # small synthetic feature dim
    batch = 8

    params = init_params(k_params, input_size)
    x = jax.random.normal(k_x, (batch, input_size), jnp.float32)

    collapsed = collapse_params(params)     # one-time offline weight folding
    out = mlp_forward(x, collapsed)
    out = jax.block_until_ready(out)

    ref = mlp_reference(x, params)
    assert out.shape == (batch, 1), out.shape
    assert jnp.allclose(out, ref, atol=1e-5, rtol=1e-4), "mismatch vs. JAX reference"

    print("KERNEL_OK")
</pallas_src>

<mosaic_0001>
module attributes {stable_mosaic.version = 11 : i64} {
  func.func @collapsed_mlp_kernel(%arg0: i32, %arg1: memref<1x1xf32, #tpu.memory_space<smem>>, %arg2: memref<8x64xf32, #tpu.memory_space<vmem>>, %arg3: memref<1x64xf32, #tpu.memory_space<vmem>>, %arg4: memref<8x1xf32, #tpu.memory_space<vmem>>) attributes {dimension_semantics = [#tpu.dimension_semantics<parallel>], iteration_bounds = array<i64: 1>, scalar_prefetch = 0 : i64, scratch_operands = 0 : i64, tpu.core_type = #tpu.core_type<tc>, window_params = [{transform_indices = @transform_0, window_bounds = array<i64: 1, 1>}, {transform_indices = @transform_1, window_bounds = array<i64: 8, 64>}, {pipeline_mode = #tpu.pipeline_mode<synchronous>, transform_indices = @transform_2, window_bounds = array<i64: 1, 64>}, {transform_indices = @transform_3, window_bounds = array<i64: 8, 1>}]} {
    %c0 = arith.constant 0 : index
    %c0_0 = arith.constant 0 : index
    %0 = vector.load %arg2[%c0, %c0_0] : memref<8x64xf32, #tpu.memory_space<vmem>>, vector<8x64xf32>
    %c0_1 = arith.constant 0 : index
    %c0_2 = arith.constant 0 : index
    %1 = vector.load %arg3[%c0_1, %c0_2] : memref<1x64xf32, #tpu.memory_space<vmem>>, vector<1x64xf32>
    %2 = vector.broadcast %1 : vector<1x64xf32> to vector<8x64xf32>
    %3 = arith.mulf %0, %2 : vector<8x64xf32>
    %cst = arith.constant dense<0.000000e+00> : vector<8xf32>
    %4 = vector.multi_reduction <add>, %3, %cst [1] : vector<8x64xf32> to vector<8xf32>
    %5 = vector.shape_cast %4 : vector<8xf32> to vector<8x1xf32>
    %c0_3 = arith.constant 0 : index
    %c0_4 = arith.constant 0 : index
    %6 = memref.load %arg1[%c0_3, %c0_4] : memref<1x1xf32, #tpu.memory_space<smem>>
    %7 = vector.broadcast %6 : f32 to vector<8x1xf32>
    %8 = arith.addf %5, %7 : vector<8x1xf32>
    %c0_5 = arith.constant 0 : index
    %c0_6 = arith.constant 0 : index
    %9 = vector.load %arg4[%c0_5, %c0_6] : memref<8x1xf32, #tpu.memory_space<vmem>>, vector<8x1xf32>
    tpu.vector_store %arg4[%c0_5, %c0_6], %8 {strides = array<i32>} : memref<8x1xf32, #tpu.memory_space<vmem>>, vector<8x1xf32>,
    return
  }
  func.func @transform_0(%arg0: i32) -> (i32, i32) {
    %c0_i32 = arith.constant 0 : i32
    %c0_i32_0 = arith.constant 0 : i32
    %c0_i32_1 = arith.constant 0 : i32
    return %c0_i32, %c0_i32_0 : i32, i32
  }
  func.func @transform_1(%arg0: i32) -> (i32, i32) {
    %c0_i32 = arith.constant 0 : i32
    %c0_i32_0 = arith.constant 0 : i32
    return %arg0, %c0_i32 : i32, i32
  }
  func.func @transform_2(%arg0: i32) -> (i32, i32) {
    %c0_i32 = arith.constant 0 : i32
    %c0_i32_0 = arith.constant 0 : i32
    %c0_i32_1 = arith.constant 0 : i32
    return %c0_i32, %c0_i32_0 : i32, i32
  }
  func.func @transform_3(%arg0: i32) -> (i32, i32) {
    %c0_i32 = arith.constant 0 : i32
    %c0_i32_0 = arith.constant 0 : i32
    return %arg0, %c0_i32 : i32, i32
  }
}

</mosaic_0001>

<bundles_post_ra>
// kernel: tpu_custom_call.1
= control target key start
LH: loop header
LB: loop body
LE: loop exit
PB: predicated region body
PF: predicated region fallthrough
CT: control target
= control target key end

     0   :  { %9 = vsyncpa [#allocation4], 0  ;;  %s76_s12 = smov [#allocation3]   ;;  %s118_s0 = inlined_call_operand.<no memory space> [shape: f32[1,1], index: 0, kind: input, shape index: {}]   ;;  %s119_s1 = inlined_call_operand.hbm [shape: f32[8,64], index: 1, kind: input, shape index: {}]   ;;  %s120_s2 = inlined_call_operand.vmem [shape: f32[1,64], index: 2, kind: input, shape index: {}]   ;;  %s121_s3 = inlined_call_operand.vmem [shape: f32[8,1], index: 3, kind: output, shape index: {}]  }
   0x1   :  { %s18_s13 = sshll.u32 %s76_s12, 4  ;;  %s52_s16 = scalar_lea.hbm %s119_s1, 128  ;;  %s19_s13 = int_to_ptr.vmem [resolvable:$true] %s18_s13 }
   0x2   :  { %p53_p0 = scmp.ne.s32.totalorder %s119_s1, %s52_s16  ;;  %p56_p1 = scmp.lt.u32.totalorder %s52_s16, %s119_s1 }
   0x4   :  { %p58_p2 = pnand %p56_p1, %p53_p0 }
   0x6   :  { %61 = shalt.err (!%p58_p2)
}
   0x7   :  { %s62_s21 = scalar_lea.vmem %s19_s13, 128  ;;  %p67_p4 = scmp.lt.s32.totalorder %s19_s13, %s19_s13 }
   0x8   :  { %p63_p3 = scmp.ne.s32.totalorder %s19_s13, %s62_s21  ;;  %p68_p5 = scmp.lt.s32.totalorder %s62_s21, %s62_s21 }
   0xa   :  { %p69_p6 = por %p68_p5, %p67_p4 }
   0xc   :  { %p70_p7 = pnand %p69_p6, %p63_p3 }
   0xe   :  { %73 = shalt.err (!%p70_p7)
}
   0xf   :  { %21 = dma.hbm_to_vmem [thread:$0]  %s119_s1, 128, %s19_s13, [#allocation4]  }
  0x10   :  { %74 = dma.done.wait [#allocation4], 128  }
  0x11   :  { %75 = vsyncadd [#allocation4], 4294967168  ;;  %v27_v0 = vld [vmem:[#allocation3] sm:$0xff]  ;;  %vm36_vm0 = vcmask 523264   ;;  %v41_v4 = vstv %s118_s0  ;;  %vm43_vm1 = vcmask 7168  }
  0x12   :  { %v50_v1 = vld [vmem:[%s120_s2] ss:$0 sm:$0xff] }
  0x13   :  { %v35_v2 = vmul.f32 %v50_v1, %v27_v0 }
  0x15   :  { %v37_v3 = vsel %vm36_vm0, %v35_v2, 0.0 }
  0x16   :  { %38 = vadd.xlane.f32.xlu0 %v37_v3 }
  0xa3   :  { %v39_v5 = vpop.xlane.xlu0 %38 }
  0xa4   :  { %v42_v6 = vadd.f32 %v41_v4, %v39_v5 }
  0xa6   :  { %44 = vst.msk [vmem:[%s121_s3] sm:$0xff] %vm43_vm1, %v42_v6 }
  0xa7   :  { %49 = vsyncpa [#allocation4], 1 }

</bundles_post_ra>
